<compile_context>
chip_gen: v7x
topology: tpu7x:2x2x1
jax: 0.10.0
libtpu: 0.0.40
codegen_flags: <defaults>
</compile_context>

<pallas_src>
import functools
import numpy as np
import jax
import jax.numpy as jnp
from jax import lax
from jax.experimental import pallas as pl
from jax.experimental.pallas import tpu as pltpu

# -------------------- "args" (small, synthetic) --------------------
SEED_SIZE = 16          # args.seed_size
GEN_CONV = 8            # args.gen_conv
COLOR_CH = 3            # args.gray == False
LEAKY_SLOPE = 0.01      # nn.LeakyReLU default
BASE_HW = 4             # latent spatial size


# -------------------- structural (weight-independent) matrices, numpy --------------------
def _col_tap_placement(W, reflect):
    """P[kx, x_in, x_out] = 1 if input column x_in feeds output column x_out for tap kx."""
    P = np.zeros((3, W, W), np.float32)
    for kx in range(3):
        for xo in range(W):
            xi = xo + kx - 1
            if reflect:
                xi = 1 if xi < 0 else (W - 2 if xi > W - 1 else xi)
                P[kx, xi, xo] += 1.0
            elif 0 <= xi < W:
                P[kx, xi, xo] += 1.0
    return P


def _bilinear_matrix(H):
    """(2H, H) interpolation matrix for PyTorch bilinear 2x, align_corners=False."""
    out = 2 * H
    j = np.arange(out)
    src = np.maximum(0.0, (j + 0.5) * 0.5 - 0.5)
    x0 = np.floor(src).astype(np.int64)
    x1 = np.minimum(x0 + 1, H - 1)
    lam = (src - x0).astype(np.float32)
    U = np.zeros((out, H), np.float32)
    U[j, x0] += 1.0 - lam
    U[j, x1] += lam
    return U


# -------------------- weight repacking (one-off, outside the kernel) --------------------
def _conv3x3_to_toeplitz(w, W, reflect=False):
    """w: (3,3,Cin,Cout) HWIO -> fused (3*W*Cin, W*Cout) bf16 operand.

    Row-block k multiplies the vertically shifted slab [x_{y-1} | x_y | x_{y+1}][k];
    horizontal (x) zero / reflect padding is folded into the matrix, so the whole
    3x3 conv is ONE deep-K matmul in the kernel."""
    P = jnp.asarray(_col_tap_placement(W, reflect))
    Cin, Cout = w.shape[2], w.shape[3]
    T = jnp.einsum("kio,ykcd->yicod", P, w.astype(jnp.float32))  # (ky, x_in, Cin, x_out, Cout)
    return T.reshape(3 * W * Cin, W * Cout).astype(jnp.bfloat16)


def _conv1x1_to_block(w, W):
    """w: (1,1,Cin,Cout) -> block-diagonal (W*Cin, W*Cout) bf16."""
    Cin, Cout = w.shape[2], w.shape[3]
    return jnp.kron(jnp.eye(W, dtype=jnp.float32),
                    w.reshape(Cin, Cout).astype(jnp.float32)).astype(jnp.bfloat16)


def _bias_row(b, W):
    """bias (Cout,) -> (1, W*Cout) f32 row (lane layout is x-major, c-minor)."""
    return jnp.tile(b.astype(jnp.float32), (W,)).reshape(1, -1)


def _upsample_mats(H, C, bpg):
    """Row-upsample kron(U, I_bpg) (2H*bpg, H*bpg) and column-upsample kron(U, I_C).T."""
    U = _bilinear_matrix(H)
    UHB = np.kron(U, np.eye(bpg, dtype=np.float32))          # rows are (y, b) interleaved
    RW = np.kron(U, np.eye(C, dtype=np.float32)).T           # (H*C, 2H*C)
    return jnp.asarray(UHB, jnp.bfloat16), jnp.asarray(RW, jnp.bfloat16)


# -------------------- deterministic parameter init --------------------
def init_params(key):
    keys = jax.random.split(key, 32)
    k = iter(keys)
    scale = 0.1
    p = {
        "lin_w": scale * jax.random.normal(next(k), (SEED_SIZE, GEN_CONV * 4 * 4), jnp.float32),
        "lin_b": scale * jax.random.normal(next(k), (GEN_CONV * 4 * 4,), jnp.float32),
        "cnn": [],
        "out_w1": scale * jax.random.normal(next(k), (3, 3, GEN_CONV, GEN_CONV), jnp.float32),
        "out_b1": scale * jax.random.normal(next(k), (GEN_CONV,), jnp.float32),
        "out_w2": scale * jax.random.normal(next(k), (1, 1, GEN_CONV, COLOR_CH), jnp.float32),
        "out_b2": scale * jax.random.normal(next(k), (COLOR_CH,), jnp.float32),
    }
    for _ in range(4):  # cnn_1 .. cnn_4 expanders
        p["cnn"].append({
            "w1": scale * jax.random.normal(next(k), (3, 3, GEN_CONV, 2 * GEN_CONV), jnp.float32),
            "b1": scale * jax.random.normal(next(k), (2 * GEN_CONV,), jnp.float32),
            "w2": scale * jax.random.normal(next(k), (3, 3, 2 * GEN_CONV, GEN_CONV), jnp.float32),
            "b2": scale * jax.random.normal(next(k), (GEN_CONV,), jnp.float32),
        })
    return p


# -------------------- one-off packing of weights into MXU-friendly operands --------------------
def pack_params(params, level, batch_per_group=1):
    """Call once per (weights, level, layout); the result is reused by every forward call."""
    assert isinstance(level, int) and 0 <= level <= 4
    C, S = GEN_CONV, SEED_SIZE
    sizes = [BASE_HW * (1 << l) for l in range(level + 1)]
    Hf = sizes[-1]
    # Linear: (S, 16*C) with output lane index = y*(4*C) + x*C + c.
    lw = (params["lin_w"].reshape(S, C, 4, 4).transpose(0, 2, 3, 1)
          .reshape(S, 4 * 4 * C).astype(jnp.bfloat16))
    lb = (params["lin_b"].reshape(C, 4, 4).transpose(1, 2, 0)
          .reshape(1, 4 * 4 * C).astype(jnp.float32))
    ops = [lw, lb]
    for l in range(level):
        H = sizes[l]
        pc = params["cnn"][l]
        uhb, rw = _upsample_mats(H, C, batch_per_group)
        ops += [
            _conv3x3_to_toeplitz(pc["w1"], H, reflect=False), _bias_row(pc["b1"], H),
            _conv3x3_to_toeplitz(pc["w2"], H, reflect=False), _bias_row(pc["b2"], H),
            uhb, rw,
        ]
    ops += [
        _conv3x3_to_toeplitz(params["out_w1"], Hf, reflect=True), _bias_row(params["out_b1"], Hf),
        _conv1x1_to_block(params["out_w2"], Hf), _bias_row(params["out_b2"], Hf),
    ]
    return tuple(ops)


# -------------------- fully fused Generator.forward --------------------
@functools.partial(jax.jit, static_argnames=("level", "batch_per_group"))
def generator_forward(seed, packed, level=0, batch_per_group=1):
    assert isinstance(level, int) and 0 <= level <= 4
    assert len(packed) == 6 + 6 * level, "packed params do not match `level`"
    B = seed.shape[0]
    bpg = batch_per_group
    if B % bpg:
        raise ValueError("batch size must be divisible by batch_per_group")
    G = B // bpg
    C, S = GEN_CONV, SEED_SIZE
    sizes = [BASE_HW * (1 << l) for l in range(level + 1)]
    Hf = sizes[-1]
    f32, bf16 = jnp.float32, jnp.bfloat16

    def kernel(*refs):
        seed_ref, out_ref = refs[0], refs[-1]
        w = refs[1:-1]
        lw_ref, lb_ref = w[0], w[1]
        tail = 2 + 6 * level

        def leaky(v):
            return jnp.maximum(v, LEAKY_SLOPE * v)

        def shifted_rows(x, H, reflect):
            # Row layout: r = y*bpg + b (y-major, batch-minor).  Vertical +/-1 shifts are
            # sublane slice+concat with the boundary row(s) folded in -- no MXU work.
            if reflect:   # reflect pad: row -1 -> row 1, row H -> row H-2
                top = x[bpg:2 * bpg]
                bot = x[(H - 2) * bpg:(H - 1) * bpg]
            else:         # zero pad
                top = jnp.zeros((bpg, x.shape[1]), x.dtype)
                bot = top
            xm1 = jnp.concatenate([top, x[:(H - 1) * bpg]], axis=0)   # row y-1
            xp1 = jnp.concatenate([x[bpg:], bot], axis=0)             # row y+1
            return xm1, xp1

        def conv3x3(x, t_ref, b_ref, H, reflect):
            # x: (H*bpg, W*Cin) f32 -> (H*bpg, W*Cout) f32.  ONE deep-K matmul:
            # LHS = [x_{y-1} | x_y | x_{y+1}] lane-concat, RHS = fused Toeplitz operand.
            xm1, xp1 = shifted_rows(x, H, reflect)
            lhs = jnp.concatenate([xm1, x, xp1], axis=-1).astype(bf16)
            return jnp.dot(lhs, t_ref[...], preferred_element_type=f32) + b_ref[...]

        # ---- seed_in: single (bpg,S)x(S,16C) matmul, then lane-slice relayout to (4*bpg, 4C) ----
        res = jnp.dot(seed_ref[0].astype(bf16), lw_ref[...],
                      preferred_element_type=f32) + lb_ref[...]
        x = jnp.concatenate([res[:, y * 4 * C:(y + 1) * 4 * C] for y in range(4)], axis=0)

        # ---- expander blocks: ResidualBlock2d -> LeakyReLU -> bilinear 2x upsample ----
        for l in range(level):
            o = 2 + 6 * l
            t1, b1, t2, b2, uhb, rw = (w[o + i] for i in range(6))
            H = sizes[l]
            h = leaky(conv3x3(x, t1, b1, H, reflect=False))            # (H*bpg, W*2C)
            x = leaky(conv3x3(h, t2, b2, H, reflect=False) + x)        # residual, (H*bpg, W*C)
            # column upsample (emit bf16 directly: it feeds the next matmul anyway)
            xw = jnp.dot(x.astype(bf16), rw[...], preferred_element_type=bf16)   # (H*bpg, 2W*C)
            # row upsample (batch-interleaved kron matrix)
            x = jnp.dot(uhb[...], xw, preferred_element_type=f32)                # (2H*bpg, 2W*C)

        # ---- image_out: reflect-pad Conv3x3 -> Conv1x1 -> Tanh, then (img+1)/2 ----
        to, bo1, t11, bo2 = w[tail], w[tail + 1], w[tail + 2], w[tail + 3]
        h = conv3x3(x, to, bo1, Hf, reflect=True)                       # (Hf*bpg, Wf*C)
        img = jnp.dot(h.astype(bf16), t11[...], preferred_element_type=f32) + bo2[...]
        out_ref[0] = ((jnp.tanh(img) + 1.0) * 0.5).astype(out_ref.dtype)

    def _const_spec(arr):
        nd = arr.ndim
        return pl.BlockSpec(arr.shape, lambda g, _nd=nd: (0,) * _nd)

    in_specs = [pl.BlockSpec((1, bpg, S), lambda g: (g, 0, 0))]
    in_specs += [_const_spec(a) for a in packed]

    out2d = pl.pallas_call(
        kernel,
        out_shape=jax.ShapeDtypeStruct((G, Hf * bpg, Hf * COLOR_CH), f32),
        grid=(G,),
        in_specs=in_specs,
        out_specs=pl.BlockSpec((1, Hf * bpg, Hf * COLOR_CH), lambda g: (g, 0, 0)),
        compiler_params=pltpu.CompilerParams(
            dimension_semantics=("parallel",),    # grid steps split across v7x's 2 TensorCores
            vmem_limit_bytes=16 * 1024 * 1024,    # actual footprint << 16 MiB even at level 4
        ),
    )(seed.reshape(G, bpg, S).astype(f32), *packed)

    # rows are (y, b) interleaved within a group; lanes are x-major / c-minor (NHWC),
    # i.e. the result matches (image.permute(0, 2, 3, 1) + 1) / 2 from the PyTorch module.
    out = out2d.reshape(G, Hf, bpg, Hf, COLOR_CH).transpose(0, 2, 1, 3, 4)
    return out.reshape(B, Hf, Hf, COLOR_CH)


# -------------------- pure-JAX reference (f32, HIGHEST precision) --------------------
def generator_forward_ref(seed, params, level):
    hi = lax.Precision.HIGHEST
    B = seed.shape[0]
    x = jnp.dot(seed, params["lin_w"], precision=hi) + params["lin_b"]
    x = x.reshape(B, GEN_CONV, 4, 4).transpose(0, 2, 3, 1)    # NHWC

    def conv(x, w, b, reflect):
        if reflect:
            x = jnp.pad(x, ((0, 0), (1, 1), (1, 1), (0, 0)), mode="reflect")
            pad = "VALID"
        else:
            pad = "SAME"
        y = lax.conv_general_dilated(x, w, (1, 1), pad,
                                     dimension_numbers=("NHWC", "HWIO", "NHWC"),
                                     precision=hi)
        return y + b

    def leaky(v):
        return jnp.where(v > 0, v, LEAKY_SLOPE * v)

    for l in range(level):
        pc = params["cnn"][l]
        h = leaky(conv(x, pc["w1"], pc["b1"], False))
        x = leaky(conv(h, pc["w2"], pc["b2"], False) + x)
        U = jnp.asarray(_bilinear_matrix(x.shape[1]))
        x = jnp.einsum("ph,bhwc->bpwc", U, x, precision=hi)
        x = jnp.einsum("qw,bpwc->bpqc", U, x, precision=hi)
    h = conv(x, params["out_w1"], params["out_b1"], True)
    img = conv(h, params["out_w2"], params["out_b2"], False)
    return (jnp.tanh(img) + 1.0) * 0.5


# -------------------- demo --------------------
if __name__ == "__main__":
    key = jax.random.PRNGKey(0)
    pkey, skey = jax.random.split(key)
    params = init_params(pkey)
    seed = jax.random.normal(skey, (2, SEED_SIZE), jnp.float32)

    # level = 0, one batch element per grid step (v7x-style 2-way parallel grid).
    packed0 = pack_params(params, level=0, batch_per_group=1)
    out0 = jax.block_until_ready(generator_forward(seed, packed0, level=0, batch_per_group=1))
    assert out0.shape == (2, 4, 4, COLOR_CH), out0.shape

    # level = 2, batch folded into the row axis (v5e/v6e-style single grid step).
    packed2 = pack_params(params, level=2, batch_per_group=2)
    out2 = jax.block_until_ready(generator_forward(seed, packed2, level=2, batch_per_group=2))
    assert out2.shape == (2, 16, 16, COLOR_CH), out2.shape

    # Same level, 2 parallel grid steps; must agree with the batch-folded layout.
    packed2b = pack_params(params, level=2, batch_per_group=1)
    out2b = jax.block_until_ready(generator_forward(seed, packed2b, level=2, batch_per_group=1))

    # Validate against the f32 reference (kernel uses bf16 MXU inputs -> loose tolerance).
    ref0 = generator_forward_ref(seed, params, 0)
    ref2 = generator_forward_ref(seed, params, 2)
    assert bool(jnp.allclose(out0, ref0, atol=5e-2)), "level-0 mismatch vs reference"
    assert bool(jnp.allclose(out2, ref2, atol=5e-2)), "level-2 mismatch vs reference"
    assert bool(jnp.allclose(out2, out2b, atol=1e-3)), "layout variants disagree"

    assert bool(jnp.all(jnp.isfinite(out0))) and bool(jnp.all(jnp.isfinite(out2)))
    assert float(out0.min()) >= 0.0 and float(out0.max()) <= 1.0
    assert float(out2.min()) >= 0.0 and float(out2.max()) <= 1.0
    print("KERNEL_OK")
</pallas_src>

<mosaic_0001>
module attributes {stable_mosaic.version = 11 : i64} {
  func.func @kernel(%arg0: i32, %arg1: memref<1x1x16xf32, #tpu.memory_space<vmem>>, %arg2: memref<16x128xbf16, #tpu.memory_space<vmem>>, %arg3: memref<1x128xf32, #tpu.memory_space<vmem>>, %arg4: memref<96x32xbf16, #tpu.memory_space<vmem>>, %arg5: memref<1x32xf32, #tpu.memory_space<vmem>>, %arg6: memref<32x12xbf16, #tpu.memory_space<vmem>>, %arg7: memref<1x12xf32, #tpu.memory_space<vmem>>, %arg8: memref<1x4x12xf32, #tpu.memory_space<vmem>>) attributes {dimension_semantics = [#tpu.dimension_semantics<parallel>], iteration_bounds = array<i64: 2>, scalar_prefetch = 0 : i64, scratch_operands = 0 : i64, tpu.core_type = #tpu.core_type<tc>, window_params = [{transform_indices = @transform_0, window_bounds = array<i64: 1, 1, 16>}, {pipeline_mode = #tpu.pipeline_mode<synchronous>, transform_indices = @transform_1, window_bounds = array<i64: 16, 128>}, {pipeline_mode = #tpu.pipeline_mode<synchronous>, transform_indices = @transform_2, window_bounds = array<i64: 1, 128>}, {pipeline_mode = #tpu.pipeline_mode<synchronous>, transform_indices = @transform_3, window_bounds = array<i64: 96, 32>}, {pipeline_mode = #tpu.pipeline_mode<synchronous>, transform_indices = @transform_4, window_bounds = array<i64: 1, 32>}, {pipeline_mode = #tpu.pipeline_mode<synchronous>, transform_indices = @transform_5, window_bounds = array<i64: 32, 12>}, {pipeline_mode = #tpu.pipeline_mode<synchronous>, transform_indices = @transform_6, window_bounds = array<i64: 1, 12>}, {transform_indices = @transform_7, window_bounds = array<i64: 1, 4, 12>}]} {
    %c0 = arith.constant 0 : index
    %c0_0 = arith.constant 0 : index
    %c0_1 = arith.constant 0 : index
    %0 = vector.load %arg1[%c0, %c0_0, %c0_1] : memref<1x1x16xf32, #tpu.memory_space<vmem>>, vector<1x1x16xf32>
    %1 = vector.shape_cast %0 : vector<1x1x16xf32> to vector<1x16xf32>
    %2 = arith.truncf %1 : vector<1x16xf32> to vector<1x16xbf16>
    %c0_2 = arith.constant 0 : index
    %c0_3 = arith.constant 0 : index
    %3 = vector.load %arg2[%c0_2, %c0_3] : memref<16x128xbf16, #tpu.memory_space<vmem>>, vector<16x128xbf16>
    %cst = arith.constant dense<0.000000e+00> : vector<1x128xf32>
    %4 = tpu.matmul %2, %3, %cst {dimension_numbers = #tpu.dot_dimension_numbers<[1], [0], [0], [1], [0, 0, 1, 1], [], []>} : vector<1x16xbf16>, vector<16x128xbf16>, vector<1x128xf32> -> vector<1x128xf32>
    %c0_4 = arith.constant 0 : index
    %c0_5 = arith.constant 0 : index
    %5 = vector.load %arg3[%c0_4, %c0_5] : memref<1x128xf32, #tpu.memory_space<vmem>>, vector<1x128xf32>
    %6 = arith.addf %4, %5 : vector<1x128xf32>
    %7 = vector.extract_strided_slice %6 {offsets = [0, 0], sizes = [1, 32], strides = [1, 1]} : vector<1x128xf32> to vector<1x32xf32>
    %8 = vector.extract_strided_slice %6 {offsets = [0, 32], sizes = [1, 32], strides = [1, 1]} : vector<1x128xf32> to vector<1x32xf32>
    %9 = vector.extract_strided_slice %6 {offsets = [0, 64], sizes = [1, 32], strides = [1, 1]} : vector<1x128xf32> to vector<1x32xf32>
    %10 = vector.extract_strided_slice %6 {offsets = [0, 96], sizes = [1, 32], strides = [1, 1]} : vector<1x128xf32> to vector<1x32xf32>
    %11 = tpu.concatenate %7, %8, %9, %10 in 0 : vector<1x32xf32>, vector<1x32xf32>, vector<1x32xf32>, vector<1x32xf32> -> vector<4x32xf32>
    %12 = vector.extract_strided_slice %11 {offsets = [1, 0], sizes = [1, 32], strides = [1, 1]} : vector<4x32xf32> to vector<1x32xf32>
    %13 = vector.extract_strided_slice %11 {offsets = [2, 0], sizes = [1, 32], strides = [1, 1]} : vector<4x32xf32> to vector<1x32xf32>
    %14 = vector.extract_strided_slice %11 {offsets = [0, 0], sizes = [3, 32], strides = [1, 1]} : vector<4x32xf32> to vector<3x32xf32>
    %15 = tpu.concatenate %12, %14 in 0 : vector<1x32xf32>, vector<3x32xf32> -> vector<4x32xf32>
    %16 = vector.extract_strided_slice %11 {offsets = [1, 0], sizes = [3, 32], strides = [1, 1]} : vector<4x32xf32> to vector<3x32xf32>
    %17 = tpu.concatenate %16, %13 in 0 : vector<3x32xf32>, vector<1x32xf32> -> vector<4x32xf32>
    %18 = tpu.concatenate %15, %11, %17 in 1 : vector<4x32xf32>, vector<4x32xf32>, vector<4x32xf32> -> vector<4x96xf32>
    %19 = arith.truncf %18 : vector<4x96xf32> to vector<4x96xbf16>
    %c0_6 = arith.constant 0 : index
    %c0_7 = arith.constant 0 : index
    %20 = vector.load %arg4[%c0_6, %c0_7] : memref<96x32xbf16, #tpu.memory_space<vmem>>, vector<96x32xbf16>
    %cst_8 = arith.constant dense<0.000000e+00> : vector<4x32xf32>
    %21 = tpu.matmul %19, %20, %cst_8 {dimension_numbers = #tpu.dot_dimension_numbers<[1], [0], [0], [1], [0, 0, 1, 1], [], []>} : vector<4x96xbf16>, vector<96x32xbf16>, vector<4x32xf32> -> vector<4x32xf32>
    %c0_9 = arith.constant 0 : index
    %c0_10 = arith.constant 0 : index
    %22 = vector.load %arg5[%c0_9, %c0_10] : memref<1x32xf32, #tpu.memory_space<vmem>>, vector<1x32xf32>
    %23 = vector.broadcast %22 : vector<1x32xf32> to vector<4x32xf32>
    %24 = arith.addf %21, %23 : vector<4x32xf32>
    %25 = arith.truncf %24 : vector<4x32xf32> to vector<4x32xbf16>
    %c0_11 = arith.constant 0 : index
    %c0_12 = arith.constant 0 : index
    %26 = vector.load %arg6[%c0_11, %c0_12] : memref<32x12xbf16, #tpu.memory_space<vmem>>, vector<32x12xbf16>
    %cst_13 = arith.constant dense<0.000000e+00> : vector<4x12xf32>
    %27 = tpu.matmul %25, %26, %cst_13 {dimension_numbers = #tpu.dot_dimension_numbers<[1], [0], [0], [1], [0, 0, 1, 1], [], []>} : vector<4x32xbf16>, vector<32x12xbf16>, vector<4x12xf32> -> vector<4x12xf32>
    %c0_14 = arith.constant 0 : index
    %c0_15 = arith.constant 0 : index
    %28 = vector.load %arg7[%c0_14, %c0_15] : memref<1x12xf32, #tpu.memory_space<vmem>>, vector<1x12xf32>
    %29 = vector.broadcast %28 : vector<1x12xf32> to vector<4x12xf32>
    %30 = arith.addf %27, %29 : vector<4x12xf32>
    %31 = math.tanh %30 : vector<4x12xf32>
    %cst_16 = arith.constant 1.000000e+00 : f32
    %32 = vector.broadcast %cst_16 : f32 to vector<4x12xf32>
    %33 = arith.addf %31, %32 : vector<4x12xf32>
    %cst_17 = arith.constant 5.000000e-01 : f32
    %34 = vector.broadcast %cst_17 : f32 to vector<4x12xf32>
    %35 = arith.mulf %33, %34 : vector<4x12xf32>
    %c0_18 = arith.constant 0 : index
    %c0_19 = arith.constant 0 : index
    %c0_20 = arith.constant 0 : index
    %36 = vector.load %arg8[%c0_18, %c0_19, %c0_20] : memref<1x4x12xf32, #tpu.memory_space<vmem>>, vector<1x4x12xf32>
    %37 = vector.shape_cast %36 : vector<1x4x12xf32> to vector<4x12xf32>
    %38 = vector.shape_cast %35 : vector<4x12xf32> to vector<1x4x12xf32>
    tpu.vector_store %arg8[%c0_18, %c0_19, %c0_20], %38 {strides = array<i32>} : memref<1x4x12xf32, #tpu.memory_space<vmem>>, vector<1x4x12xf32>,
    return
  }
  func.func @transform_0(%arg0: i32) -> (i32, i32, i32) {
    %c0_i32 = arith.constant 0 : i32
    %c0_i32_0 = arith.constant 0 : i32
    %c0_i32_1 = arith.constant 0 : i32
    return %arg0, %c0_i32, %c0_i32_0 : i32, i32, i32
  }
  func.func @transform_1(%arg0: i32) -> (i32, i32) {
    %c0_i32 = arith.constant 0 : i32
    %c0_i32_0 = arith.constant 0 : i32
    %c0_i32_1 = arith.constant 0 : i32
    return %c0_i32, %c0_i32_0 : i32, i32
  }
  func.func @transform_2(%arg0: i32) -> (i32, i32) {
    %c0_i32 = arith.constant 0 : i32
    %c0_i32_0 = arith.constant 0 : i32
    %c0_i32_1 = arith.constant 0 : i32
    return %c0_i32, %c0_i32_0 : i32, i32
  }
  func.func @transform_3(%arg0: i32) -> (i32, i32) {
    %c0_i32 = arith.constant 0 : i32
    %c0_i32_0 = arith.constant 0 : i32
    %c0_i32_1 = arith.constant 0 : i32
    return %c0_i32, %c0_i32_0 : i32, i32
  }
  func.func @transform_4(%arg0: i32) -> (i32, i32) {
    %c0_i32 = arith.constant 0 : i32
    %c0_i32_0 = arith.constant 0 : i32
    %c0_i32_1 = arith.constant 0 : i32
    return %c0_i32, %c0_i32_0 : i32, i32
  }
  func.func @transform_5(%arg0: i32) -> (i32, i32) {
    %c0_i32 = arith.constant 0 : i32
    %c0_i32_0 = arith.constant 0 : i32
    %c0_i32_1 = arith.constant 0 : i32
    return %c0_i32, %c0_i32_0 : i32, i32
  }
  func.func @transform_6(%arg0: i32) -> (i32, i32) {
    %c0_i32 = arith.constant 0 : i32
    %c0_i32_0 = arith.constant 0 : i32
    %c0_i32_1 = arith.constant 0 : i32
    return %c0_i32, %c0_i32_0 : i32, i32
  }
  func.func @transform_7(%arg0: i32) -> (i32, i32, i32) {
    %c0_i32 = arith.constant 0 : i32
    %c0_i32_0 = arith.constant 0 : i32
    %c0_i32_1 = arith.constant 0 : i32
    return %arg0, %c0_i32, %c0_i32_0 : i32, i32, i32
  }
}

</mosaic_0001>

<bundles_post_ra>
// kernel: generator_forward.1
= control target key start
LH: loop header
LB: loop body
LE: loop exit
PB: predicated region body
PF: predicated region fallthrough
CT: control target
= control target key end

     0   :  { %s727_s24 = smov 0   ;;  %s788_s0 = inlined_call_operand.vmem [shape: f32[2,1,16], index: 0, kind: input, shape index: {}]   ;;  %s789_s1 = inlined_call_operand.vmem [shape: bf16[16,128], index: 1, kind: input, shape index: {}]   ;;  %s790_s2 = inlined_call_operand.vmem [shape: f32[1,128], index: 2, kind: input, shape index: {}]   ;;  %s791_s3 = inlined_call_operand.vmem [shape: bf16[96,32], index: 3, kind: input, shape index: {}]   ;;  %s792_s4 = inlined_call_operand.vmem [shape: f32[1,32], index: 4, kind: input, shape index: {}]   ;;  %s793_s5 = inlined_call_operand.vmem [shape: bf16[32,12], index: 5, kind: input, shape index: {}]   ;;  %s794_s6 = inlined_call_operand.vmem [shape: f32[1,12], index: 6, kind: input, shape index: {}]   ;;  %s795_s7 = inlined_call_operand.vmem [shape: f32[2,4,12], index: 7, kind: output, shape index: {}]  }
   0x1 LB: > { %s586_s25 = sadd.s32 4294967295, %s680_s24   ;;  %p590_p0 = scmp.ge.s32.totalorder %s680_s24, 1  ;;  %s680_s24 = sphi %s727_s24, %s17_s24  }
   0x2   : > { %p235_p1 = scmp.lt.s32.totalorder %s680_s24, 3 }
   0x4   : > { %p236_p2 = pnand %p590_p0, %p235_p1 }
   0x5   : > { %v663_v0 = vld [vmem:[%s789_s1] sm:$0xff] (!%p236_p2)   ;;  %v682_v1 = vmov (!%p236_p2), 0.0   ;;  %p264_p3 = scmp.lt.s32.totalorder (!%p236_p2), %s586_s25, 1  ;;  %vm683_vm0 = vmmov (!%p236_p2), 0   ;;  %vm283_vm1 = vcmask (!%p236_p2), 130048   ;;  %v665_v13 = vld [vmem:[%s791_s3 + $0x8] sm:$0xff] (!%p236_p2)  }
   0x6   : > { %239 = sbr.rel (%p236_p2) target bundleno = 922 (0x39a), region = 48  ;;  %620 = vmatprep.subr.bf16.mxu0 (!%p236_p2), %v682_v1  ;;  %626 = vmatprep.subr.bf16.mxu1 (!%p236_p2), %v682_v1  ;;  %v276_v4 = vld [vmem:[%s790_s2] sm:$0x1] (!%p236_p2)  ;;  %s684_s14 = smov (!%p236_p2), 32   ;;  %v666_v15 = vld [vmem:[%s791_s3 + $0x10] sm:$0xff] (!%p236_p2)   ;;  %v667_v16 = vld [vmem:[%s791_s3 + $0x18] sm:$0xff] (!%p236_p2)  }
   0x7   : > { %621 = vmatpush3.bf16.msra.mxu0 (!%p236_p2), %v663_v0  ;;  %622 = vmatprep.mubr.msk.bf16.mxu0 (!%p236_p2), %vm683_vm0, %v682_v1  ;;  %v664_v8 = vld [vmem:[%s791_s3] sm:$0xff] (!%p236_p2)   ;;  %s685_s15 = smov (!%p236_p2), 96   ;;  %s686_s18 = smov (!%p236_p2), 64   ;;  %v669_v18 = vld [vmem:[%s791_s3 + $0x28] sm:$0xff] (!%p236_p2)   ;;  %vm340_vm2 = vcmask (!%p236_p2), 1040384   ;;  %vm342_vm3 = vcmask (!%p236_p2), 1041408  }
   0x8   : > { %638 = vmatprep.mubr.msk.bf16.mxu1 (!%p236_p2), %vm683_vm0, %v682_v1  ;;  %642 = vmatprep.subr.bf16.mxu0 (!%p236_p2), %v682_v1  ;;  %v668_v17 = vld [vmem:[%s791_s3 + $0x20] sm:$0xff] (!%p236_p2)   ;;  %vm344_vm4 = vcmask (!%p236_p2), 1042432   ;;  %vm360_vm5 = vcmask (!%p236_p2), 261120   ;;  %vm362_vm6 = vcmask (!%p236_p2), 523264   ;;  %vm420_vm7 = vcmask (!%p236_p2), 785408   ;;  %v671_v35 = vld [vmem:[%s793_s5 + $0x8] sm:$0xff] (!%p236_p2)  }
   0x9   : > { %627 = vmatpush3.bf16.msra.mxu1 (!%p236_p2), %v664_v8  ;;  %v670_v20 = vld [vmem:[%s793_s5] sm:$0xff] (!%p236_p2)   ;;  %vm534_vm8 = vcmask (!%p236_p2), 93184  }
   0xa   : > { %628 = vmatprep.subr.bf16.mxu1 (!%p236_p2), %v682_v1  ;;  %v594_v36 = vld [vmem:[%s792_s4] ss:$0 sm:$0xff] (!%p236_p2) }
   0xb   : > { %v602_v43 = vld [vmem:[%s794_s6] ss:$0 sm:$0xff] (!%p236_p2) }
   0xd   : > { %s797_s25 = smov (!%p264_p3, %s586_s25), 1  ;;  %629 = vmatpush3.bf16.msra.mxu1 %v665_v13 }
   0xe   : > { %s266_s30 = scalar_lea.vmem %s788_s0, %s797_s25  ;;  %630 = vmatprep.subr.bf16.mxu1 %v682_v1  ;;  %s591_s12 = sshll.u32 %s797_s25, 2 }
   0xf   : > { %v272_v2 = vld [vmem:[%s266_s30] sm:$0x1] }
  0x10   : > { %v273_v3 = vpack.c.bf16 %v272_v2, %v272_v2 }
  0x11   : > { %631 = vmatpush3.bf16.msra.mxu1 %v666_v15 }
  0x12   : > { %623 = vmatmul.mubr.msk.bf16.vlgmr.msra.gmra.mrb[0].mxu0 %vm283_vm1, %v273_v3  ;;  %632 = vmatprep.subr.bf16.mxu1 %v682_v1 }
  0x13   : > { %646 = vmatprep.mubr.msk.bf16.mxu0 %vm683_vm0, %v682_v1  ;;  %643 = vmatpush3.bf16.msra.mxu0 %v670_v20 }
  0x14   : > { %644 = vmatprep.subr.bf16.mxu0 %v682_v1 }
  0x15   : > { %633 = vmatpush3.bf16.msra.mxu1 %v667_v16 }
  0x16   : > { %634 = vmatprep.subr.bf16.mxu1 %v682_v1 }
  0x17   : > { %645 = vmatpush3.bf16.msra.mxu0 %v671_v35 }
  0x19   : > { %635 = vmatpush3.bf16.msra.mxu1 %v668_v17 }
  0x1a   : > { %636 = vmatprep.subr.bf16.mxu1 %v682_v1 }
  0x1d   : > { %637 = vmatpush3.bf16.msra.mxu1 %v669_v18 }
  0xe5   : > { %v321_v5 = vpop.f32.mrb[0].mxu0 }
  0xe6   : > { %v322_v6 = vadd.f32 %v321_v5, %v276_v4  ;;  %v624_v7 = vpop.f32.mrb[1].mxu0 }
  0xe7   : > { %v324_v9 = vpop.f32.mrb[2].mxu0 }
  0xe8   : > { %v625_v10 = vpop.f32.mrb[3].mxu0  ;;  %v336_v11 = vrot.slane %v322_v6, 5  ;;  %v328_v12 = vrot.slane %v322_v6, 7  ;;  %v332_v14 = vrot.slane %v322_v6, 6 }
  0xea   : > { %337 = vrot.lane.b32.xlu1 %v336_v11, %s684_s14  ;;  %329 = vrot.lane.b32.xlu0 %v328_v12, %s685_s15  ;;  %s270_s15 = scalar_lea.vmem %s795_s7, %s591_s12 }
  0xee   : > { %333 = vrot.lane.b32.xlu0 %v332_v14, %s686_s18 }
 0x15c   : > { %v330_v19 = vpop.permute.xlu0 %329  ;;  %v338_v23 = vpop.permute.xlu1 %337 }
 0x15d   : > { %v341_v21 = vsel %vm340_vm2, %v322_v6, %v330_v19 }
 0x160   : > { %v334_v22 = vpop.permute.xlu0 %333 }
 0x161   : > { %v343_v24 = vsel %vm342_vm3, %v341_v21, %v334_v22 }
 0x162   : > { %v345_v25 = vsel %vm344_vm4, %v343_v24, %v338_v23 }
 0x163   : > { %353 = vrot.lane.b32.xlu1 %v345_v25, %s684_s14  ;;  %v347_v26 = vrot.slane %v345_v25, 1  ;;  %v349_v27 = vrot.slane %v345_v25, 7 }
 0x165   : > { %v352_v28 = vsel %vm344_vm4, %v347_v26, %v349_v27  ;;  %v351_v29 = vsel %vm340_vm2, %v347_v26, %v349_v27 }
 0x166   : > { %357 = vrot.lane.b32.xlu0 %v352_v28, %s686_s18 }
 0x1d5   : > { %v354_v30 = vpop.permute.xlu1 %353 }
 0x1d6   : > { %v361_v31 = vsel %vm360_vm5, %v351_v29, %v354_v30 }
 0x1d8   : > { %v358_v32 = vpop.permute.xlu0 %357 }
 0x1d9   : > { %v363_v33 = vsel %vm362_vm6, %v361_v31, %v358_v32 }
 0x1da   : > { %v364_v34 = vpack.c.bf16 %v363_v33, %v363_v33 }
 0x1dc   : > { %639 = vmatmul.mubr.msk.bf16.vlgmr.msra.gmra.mrb[0].mxu1 %vm420_vm7, %v364_v34 }
 0x2af   : > { %v458_v37 = vpop.f32.mrb[0].mxu1 }
 0x2b0   : > { %v459_v38 = vadd.f32 %v594_v36, %v458_v37  ;;  %v640_v39 = vpop.f32.mrb[1].mxu1 }
 0x2b1   : > { %v461_v40 = vpop.f32.mrb[2].mxu1 }
 0x2b2   : > { %v464_v41 = vpack.c.bf16 %v459_v38, %v459_v38  ;;  %v641_v42 = vpop.f32.mrb[3].mxu1 }
 0x2b4   : > { %647 = vmatmul.mubr.msk.bf16.vlgmr.msra.gmra.mrb[4].mxu0 %vm360_vm5, %v464_v41 }
 0x387   : > { %v525_v44 = vpop.f32.mrb[4].mxu0 }
 0x388   : > { %v526_v45 = vadd.f32 %v602_v43, %v525_v44  ;;  %v648_v46 = vpop.f32.mrb[5].mxu0 }
 0x389   : > { %v528_v47 = vpop.f32.mrb[6].mxu0 }
 0x38a   : > { %672 = vtanh.f32 %v526_v45  ;;  %v649_v48 = vpop.f32.mrb[7].mxu0 }
 0x394   : > { %v673_v49 = vpop.eup %672 }
 0x395   : > { %v532_v50 = vadd.f32 1.0, %v673_v49 }
 0x397   : > { %v533_v51 = vmul.f32 0.5, %v532_v50 }
 0x399   : > { %535 = vst.msk [vmem:[%s270_s15] sm:$0xf] %vm534_vm8, %v533_v51 }
 0x39a PF: > { %s17_s24 = sadd.s32 1, %s680_s24  }
 0x39b   : > { %p14_p4 = scmp.ge.s32.totalorder %s17_s24, 4  }
 0x39d   :  { %16 = sbr.rel (!%p14_p4) target bundleno = 1 (0x1), region = 78 }

</bundles_post_ra>
